<compile_context>
chip_gen: v7x
topology: tpu7x:2x2x1
jax: 0.10.0
libtpu: 0.0.40
codegen_flags: <defaults>
</compile_context>

<pallas_src>
import jax
import jax.numpy as jnp
from jax import lax
from jax.experimental import pallas as pl
from jax.experimental.pallas import tpu as pltpu

EPS = 1e-5


def _pick_spatial_tile(p, c, dtype_bytes=4, budget_bytes=2 * 1024 * 1024):
    """Largest multiple of 128 that divides p and keeps a (c, tile) block within budget.

    Keeps double-buffered x/out tiles well inside v7x's 64 MiB per-core VMEM."""
    max_tile = max(128, budget_bytes // (c * dtype_bytes))
    t = (min(p, max_tile) // 128) * 128
    while t >= 128:
        if p % t == 0:
            return t
        t -= 128
    return p  # full spatial axis (legal: block dim == array dim)


def stats_kernel(x_ref, mu0_ref, ssum_ref, sgram_ref):
    """Accumulate shifted per-channel sums and the shifted CxC Gram of x.

    x_ref: (C, TP) f32 tile.  Outputs are VMEM-resident accumulators (constant
    index_map): mu0 (C,1) = mean of the first tile (shift point),
    ssum (C,1) = sum of (x - mu0), sgram (C,C) = sum of (x - mu0)(x - mu0)^T.
    """
    step = pl.program_id(0) * pl.num_programs(1) + pl.program_id(1)
    x = x_ref[...]                                     # (C, TP), lane-dense

    @pl.when(step == 0)
    def _init():
        mu0_ref[...] = jnp.mean(x, axis=1, keepdims=True)
        ssum_ref[...] = jnp.zeros_like(ssum_ref)
        sgram_ref[...] = jnp.zeros_like(sgram_ref)

    xc = x - mu0_ref[...]
    ssum_ref[...] += jnp.sum(xc, axis=1, keepdims=True)
    # (C, TP) x (C, TP) contracting the (large) spatial axis on the MXU -> (C, C).
    sgram_ref[...] += lax.dot_general(
        xc, xc, (((1,), (1,)), ((), ())), preferred_element_type=jnp.float32)


def apply_kernel(a_ref, d_ref, x_ref, o_ref):
    """out = (A_eff + I) @ x + d_eff : conv1+bn1+conv2+bn2+residual, fully folded."""
    o_ref[...] = (
        jnp.dot(a_ref[...], x_ref[...], preferred_element_type=jnp.float32)
        + d_ref[...])


def _fold_resblock_affine(mu0, ssum, sgram, m_total, params):
    """Fold conv1 + bn1 + conv2 + bn2 + residual into `out = (A+I) x + d` per pixel.

    Training-mode BN statistics of h1/h2 follow from x's mean / covariance since
    the whole block is affine in x (1x1 convs).  Tiny CxC math, done in plain JAX.
    """
    c = sgram.shape[0]
    dm = ssum[:, 0] / m_total                    # mean_x - mu0  (small -> no cancellation)
    mean_x = mu0[:, 0] + dm
    cov_x = sgram / m_total - jnp.outer(dm, dm)  # biased covariance of x over N*H*W

    w1, b1, g1, be1 = params["w1"], params["b1"], params["g1"], params["be1"]
    w2, b2, g2, be2 = params["w2"], params["b2"], params["g2"], params["be2"]

    # bn1(conv1(x)) = A1 x + d1
    mean1 = w1 @ mean_x + b1
    var1 = jnp.sum((w1 @ cov_x) * w1, axis=1)    # diag(W1 Cov W1^T), biased
    s1 = g1 * lax.rsqrt(var1 + EPS)
    a1 = s1[:, None] * w1
    d1 = s1 * (b1 - mean1) + be1

    # bn2(conv2(.)) = A_eff x + d_eff
    b2m = w2 @ a1
    c2 = w2 @ d1 + b2
    mean2 = b2m @ mean_x + c2
    var2 = jnp.sum((b2m @ cov_x) * b2m, axis=1)
    s2 = g2 * lax.rsqrt(var2 + EPS)
    a_eff = s2[:, None] * b2m
    d_eff = s2 * (c2 - mean2) + be2

    # Residual add folded into the matrix: out = (A_eff + I) x + d_eff.
    return a_eff + jnp.eye(c, dtype=a_eff.dtype), d_eff[:, None]


def _resblock_forward(x_nchw, params):
    n, c, h, w = x_nchw.shape
    p = h * w
    x3d = x_nchw.reshape(n, c, p)            # NCHW -> (N, C, H*W): pure reshape, no transpose
    tp = _pick_spatial_tile(p, c)
    grid = (n, p // tp)

    vmem_limit = 32 * 1024 * 1024            # safe on v5e/v6e (128 MiB) and v7x (64 MiB)
    cparams_seq = pltpu.CompilerParams(
        dimension_semantics=("arbitrary", "arbitrary"),   # accumulator outputs revisited
        vmem_limit_bytes=vmem_limit)
    cparams_par = pltpu.CompilerParams(
        dimension_semantics=("parallel", "parallel"),     # megacore sharding on v7x
        vmem_limit_bytes=vmem_limit)

    x_spec = pl.BlockSpec((None, c, tp), lambda i, j: (i, 0, j))

    def const_spec(shape):                   # VMEM-resident across all grid steps
        return pl.BlockSpec(shape, lambda i, j: (0, 0))

    # ---- pass 1: per-channel (shifted) sum + CxC Gram, accumulated over all tiles ----
    mu0, ssum, sgram = pl.pallas_call(
        stats_kernel,
        out_shape=(jax.ShapeDtypeStruct((c, 1), jnp.float32),
                   jax.ShapeDtypeStruct((c, 1), jnp.float32),
                   jax.ShapeDtypeStruct((c, c), jnp.float32)),
        grid=grid,
        in_specs=[x_spec],
        out_specs=(const_spec((c, 1)), const_spec((c, 1)), const_spec((c, c))),
        compiler_params=cparams_seq,
    )(x3d)

    # ---- tiny CxC fold of conv/BN/conv/BN/residual into one affine map ----
    a_io, d_eff = _fold_resblock_affine(mu0, ssum, sgram, float(n * p), params)

    # ---- pass 2: out = A_io @ x + d_eff, tiled over (batch, spatial) ----
    out3d = pl.pallas_call(
        apply_kernel,
        out_shape=jax.ShapeDtypeStruct((n, c, p), jnp.float32),
        grid=grid,
        in_specs=[const_spec((c, c)),   # folded weight (incl. residual identity), resident
                  const_spec((c, 1)),   # folded per-channel bias, resident
                  x_spec],              # if profiling shows exposed DMA, add
                                        #   pipeline_mode=pl.Buffered(3) here
        out_specs=x_spec,               # lane-dense (tp is a multiple of 128) -> unmasked vst
        compiler_params=cparams_par,
    )(a_io, d_eff, x3d)

    return out3d.reshape(n, c, h, w)


resblock_forward = jax.jit(_resblock_forward)


def make_params(key, in_channels, out_channels):
    """Deterministic synthetic parameters matching the PyTorch module's shapes.

    Conv weights stored as (out, in) (== PyTorch weight[:, :, 0, 0]); biases and
    BN gamma/beta as 1-D (out,)."""
    assert in_channels == out_channels, "residual add requires in_channels == out_channels"
    c = out_channels
    k1, k2, k3, k4 = jax.random.split(key, 4)
    w1 = 0.1 * jax.random.normal(k1, (c, in_channels), jnp.float32)
    b1 = 0.05 * jax.random.normal(k2, (c,), jnp.float32)
    w2 = 0.1 * jax.random.normal(k3, (c, c), jnp.float32)
    b2 = 0.05 * jax.random.normal(k4, (c,), jnp.float32)
    g1 = 1.0 + 0.1 * jnp.arange(c, dtype=jnp.float32)
    be1 = 0.01 * jnp.arange(c, dtype=jnp.float32)
    g2 = 1.0 - 0.05 * jnp.arange(c, dtype=jnp.float32)
    be2 = -0.02 * jnp.arange(c, dtype=jnp.float32)
    return {"w1": w1, "b1": b1, "g1": g1, "be1": be1,
            "w2": w2, "b2": b2, "g2": g2, "be2": be2}


def reference_forward(x_nchw, params):
    """Pure-JAX replica of the PyTorch forward (training-mode BN, eps=1e-5)."""
    n, c, h, w = x_nchw.shape
    x = x_nchw.reshape(n, c, h * w)

    def conv1x1(a, wmat, bias):
        return jnp.einsum('oc,ncp->nop', wmat, a) + bias[None, :, None]

    def bn(a, g, be):
        m = jnp.mean(a, axis=(0, 2), keepdims=True)
        v = jnp.mean((a - m) ** 2, axis=(0, 2), keepdims=True)
        return (a - m) / jnp.sqrt(v + EPS) * g[None, :, None] + be[None, :, None]

    y = bn(conv1x1(x, params["w1"], params["b1"]), params["g1"], params["be1"])
    y = bn(conv1x1(y, params["w2"], params["b2"]), params["g2"], params["be2"])
    return (y + x).reshape(n, c, h, w)


if __name__ == "__main__":
    key = jax.random.PRNGKey(0)
    kx, kp = jax.random.split(key)

    N, C, H, W = 2, 4, 16, 16              # in_channels == out_channels == 4
    x = jax.random.normal(kx, (N, C, H, W), jnp.float32)
    params = make_params(kp, C, C)

    out = jax.block_until_ready(resblock_forward(x, params))
    ref = jax.block_until_ready(reference_forward(x, params))

    assert out.shape == (N, C, H, W)
    assert jnp.allclose(out, ref, atol=2e-4, rtol=2e-4), "mismatch vs reference"

    print("KERNEL_OK")
</pallas_src>

<mosaic_0001>
module attributes {stable_mosaic.version = 11 : i64} {
  func.func @stats_kernel(%arg0: i32, %arg1: i32, %arg2: memref<1x4x256xf32, #tpu.memory_space<vmem>>, %arg3: memref<4x1xf32, #tpu.memory_space<vmem>>, %arg4: memref<4x1xf32, #tpu.memory_space<vmem>>, %arg5: memref<4x4xf32, #tpu.memory_space<vmem>>) attributes {dimension_semantics = [#tpu.dimension_semantics<arbitrary>, #tpu.dimension_semantics<arbitrary>], iteration_bounds = array<i64: 2, 1>, scalar_prefetch = 0 : i64, scratch_operands = 0 : i64, tpu.core_type = #tpu.core_type<tc>, window_params = [{transform_indices = @transform_0, window_bounds = array<i64: 1, 4, 256>}, {pipeline_mode = #tpu.pipeline_mode<synchronous>, transform_indices = @transform_1, window_bounds = array<i64: 4, 1>}, {pipeline_mode = #tpu.pipeline_mode<synchronous>, transform_indices = @transform_2, window_bounds = array<i64: 4, 1>}, {pipeline_mode = #tpu.pipeline_mode<synchronous>, transform_indices = @transform_3, window_bounds = array<i64: 4, 4>}]} {
    %c1_i32 = arith.constant 1 : i32
    %0 = arith.muli %arg0, %c1_i32 : i32
    %1 = arith.addi %0, %arg1 : i32
    %c0 = arith.constant 0 : index
    %c0_0 = arith.constant 0 : index
    %c0_1 = arith.constant 0 : index
    %2 = vector.load %arg2[%c0, %c0_0, %c0_1] : memref<1x4x256xf32, #tpu.memory_space<vmem>>, vector<1x4x256xf32>
    %3 = vector.shape_cast %2 : vector<1x4x256xf32> to vector<4x256xf32>
    %c0_i32 = arith.constant 0 : i32
    %4 = arith.cmpi eq, %1, %c0_i32 : i32
    %5 = arith.extui %4 : i1 to i32
    %c0_i32_2 = arith.constant 0 : i32
    %6 = arith.cmpi ne, %5, %c0_i32_2 : i32
    scf.if %6 {
      %cst_14 = arith.constant dense<0.000000e+00> : vector<4xf32>
      %19 = vector.multi_reduction <add>, %3, %cst_14 [1] : vector<4x256xf32> to vector<4xf32>
      %20 = vector.shape_cast %19 : vector<4xf32> to vector<4x1xf32>
      %cst_15 = arith.constant 2.560000e+02 : f32
      %21 = vector.broadcast %cst_15 : f32 to vector<4x1xf32>
      %22 = arith.divf %20, %21 : vector<4x1xf32>
      %c0_16 = arith.constant 0 : index
      %c0_17 = arith.constant 0 : index
      %23 = vector.load %arg3[%c0_16, %c0_17] : memref<4x1xf32, #tpu.memory_space<vmem>>, vector<4x1xf32>
      tpu.vector_store %arg3[%c0_16, %c0_17], %22 {strides = array<i32>} : memref<4x1xf32, #tpu.memory_space<vmem>>, vector<4x1xf32>,
      %cst_18 = arith.constant 0.000000e+00 : f32
      %24 = vector.broadcast %cst_18 : f32 to vector<4x1xf32>
      %c0_19 = arith.constant 0 : index
      %c0_20 = arith.constant 0 : index
      %25 = vector.load %arg4[%c0_19, %c0_20] : memref<4x1xf32, #tpu.memory_space<vmem>>, vector<4x1xf32>
      tpu.vector_store %arg4[%c0_19, %c0_20], %24 {strides = array<i32>} : memref<4x1xf32, #tpu.memory_space<vmem>>, vector<4x1xf32>,
      %cst_21 = arith.constant 0.000000e+00 : f32
      %26 = vector.broadcast %cst_21 : f32 to vector<4x4xf32>
      %c0_22 = arith.constant 0 : index
      %c0_23 = arith.constant 0 : index
      %27 = vector.load %arg5[%c0_22, %c0_23] : memref<4x4xf32, #tpu.memory_space<vmem>>, vector<4x4xf32>
      tpu.vector_store %arg5[%c0_22, %c0_23], %26 {strides = array<i32>} : memref<4x4xf32, #tpu.memory_space<vmem>>, vector<4x4xf32>,
    } else {
    }
    %c0_3 = arith.constant 0 : index
    %c0_4 = arith.constant 0 : index
    %7 = vector.load %arg3[%c0_3, %c0_4] : memref<4x1xf32, #tpu.memory_space<vmem>>, vector<4x1xf32>
    %8 = vector.broadcast %7 : vector<4x1xf32> to vector<4x256xf32>
    %9 = arith.subf %3, %8 : vector<4x256xf32>
    %c0_5 = arith.constant 0 : index
    %c0_6 = arith.constant 0 : index
    %10 = vector.load %arg4[%c0_5, %c0_6] : memref<4x1xf32, #tpu.memory_space<vmem>>, vector<4x1xf32>
    %cst = arith.constant dense<0.000000e+00> : vector<4xf32>
    %11 = vector.multi_reduction <add>, %9, %cst [1] : vector<4x256xf32> to vector<4xf32>
    %12 = vector.shape_cast %11 : vector<4xf32> to vector<4x1xf32>
    %13 = arith.addf %10, %12 : vector<4x1xf32>
    %c0_7 = arith.constant 0 : index
    %c0_8 = arith.constant 0 : index
    %14 = vector.load %arg4[%c0_7, %c0_8] : memref<4x1xf32, #tpu.memory_space<vmem>>, vector<4x1xf32>
    tpu.vector_store %arg4[%c0_7, %c0_8], %13 {strides = array<i32>} : memref<4x1xf32, #tpu.memory_space<vmem>>, vector<4x1xf32>,
    %c0_9 = arith.constant 0 : index
    %c0_10 = arith.constant 0 : index
    %15 = vector.load %arg5[%c0_9, %c0_10] : memref<4x4xf32, #tpu.memory_space<vmem>>, vector<4x4xf32>
    %cst_11 = arith.constant dense<0.000000e+00> : vector<4x4xf32>
    %16 = tpu.matmul %9, %9, %cst_11 {dimension_numbers = #tpu.dot_dimension_numbers<[1], [1], [0], [0], [0, 0, 1, 0], [], []>} : vector<4x256xf32>, vector<4x256xf32>, vector<4x4xf32> -> vector<4x4xf32>
    %17 = arith.addf %15, %16 : vector<4x4xf32>
    %c0_12 = arith.constant 0 : index
    %c0_13 = arith.constant 0 : index
    %18 = vector.load %arg5[%c0_12, %c0_13] : memref<4x4xf32, #tpu.memory_space<vmem>>, vector<4x4xf32>
    tpu.vector_store %arg5[%c0_12, %c0_13], %17 {strides = array<i32>} : memref<4x4xf32, #tpu.memory_space<vmem>>, vector<4x4xf32>,
    return
  }
  func.func @transform_0(%arg0: i32, %arg1: i32) -> (i32, i32, i32) {
    %c0_i32 = arith.constant 0 : i32
    %c0_i32_0 = arith.constant 0 : i32
    return %arg0, %c0_i32, %arg1 : i32, i32, i32
  }
  func.func @transform_1(%arg0: i32, %arg1: i32) -> (i32, i32) {
    %c0_i32 = arith.constant 0 : i32
    %c0_i32_0 = arith.constant 0 : i32
    %c0_i32_1 = arith.constant 0 : i32
    return %c0_i32, %c0_i32_0 : i32, i32
  }
  func.func @transform_2(%arg0: i32, %arg1: i32) -> (i32, i32) {
    %c0_i32 = arith.constant 0 : i32
    %c0_i32_0 = arith.constant 0 : i32
    %c0_i32_1 = arith.constant 0 : i32
    return %c0_i32, %c0_i32_0 : i32, i32
  }
  func.func @transform_3(%arg0: i32, %arg1: i32) -> (i32, i32) {
    %c0_i32 = arith.constant 0 : i32
    %c0_i32_0 = arith.constant 0 : i32
    %c0_i32_1 = arith.constant 0 : i32
    return %c0_i32, %c0_i32_0 : i32, i32
  }
}

module attributes {stable_mosaic.version = 11 : i64} {
  func.func @apply_kernel(%arg0: i32, %arg1: i32, %arg2: memref<4x4xf32, #tpu.memory_space<vmem>>, %arg3: memref<4x1xf32, #tpu.memory_space<vmem>>, %arg4: memref<1x4x256xf32, #tpu.memory_space<vmem>>, %arg5: memref<1x4x256xf32, #tpu.memory_space<vmem>>) attributes {dimension_semantics = [#tpu.dimension_semantics<parallel>, #tpu.dimension_semantics<parallel>], iteration_bounds = array<i64: 2, 1>, scalar_prefetch = 0 : i64, scratch_operands = 0 : i64, tpu.core_type = #tpu.core_type<tc>, window_params = [{pipeline_mode = #tpu.pipeline_mode<synchronous>, transform_indices = @transform_0, window_bounds = array<i64: 4, 4>}, {pipeline_mode = #tpu.pipeline_mode<synchronous>, transform_indices = @transform_1, window_bounds = array<i64: 4, 1>}, {transform_indices = @transform_2, window_bounds = array<i64: 1, 4, 256>}, {transform_indices = @transform_3, window_bounds = array<i64: 1, 4, 256>}]} {
    %c0 = arith.constant 0 : index
    %c0_0 = arith.constant 0 : index
    %0 = vector.load %arg2[%c0, %c0_0] : memref<4x4xf32, #tpu.memory_space<vmem>>, vector<4x4xf32>
    %c0_1 = arith.constant 0 : index
    %c0_2 = arith.constant 0 : index
    %c0_3 = arith.constant 0 : index
    %1 = vector.load %arg4[%c0_1, %c0_2, %c0_3] : memref<1x4x256xf32, #tpu.memory_space<vmem>>, vector<1x4x256xf32>
    %2 = vector.shape_cast %1 : vector<1x4x256xf32> to vector<4x256xf32>
    %cst = arith.constant dense<0.000000e+00> : vector<4x256xf32>
    %3 = tpu.matmul %0, %2, %cst {dimension_numbers = #tpu.dot_dimension_numbers<[1], [0], [0], [1], [0, 0, 1, 1], [], []>} : vector<4x4xf32>, vector<4x256xf32>, vector<4x256xf32> -> vector<4x256xf32>
    %c0_4 = arith.constant 0 : index
    %c0_5 = arith.constant 0 : index
    %4 = vector.load %arg3[%c0_4, %c0_5] : memref<4x1xf32, #tpu.memory_space<vmem>>, vector<4x1xf32>
    %5 = vector.broadcast %4 : vector<4x1xf32> to vector<4x256xf32>
    %6 = arith.addf %3, %5 : vector<4x256xf32>
    %c0_6 = arith.constant 0 : index
    %c0_7 = arith.constant 0 : index
    %c0_8 = arith.constant 0 : index
    %7 = vector.load %arg5[%c0_6, %c0_7, %c0_8] : memref<1x4x256xf32, #tpu.memory_space<vmem>>, vector<1x4x256xf32>
    %8 = vector.shape_cast %7 : vector<1x4x256xf32> to vector<4x256xf32>
    %9 = vector.shape_cast %6 : vector<4x256xf32> to vector<1x4x256xf32>
    tpu.vector_store %arg5[%c0_6, %c0_7, %c0_8], %9 {strides = array<i32>} : memref<1x4x256xf32, #tpu.memory_space<vmem>>, vector<1x4x256xf32>,
    return
  }
  func.func @transform_0(%arg0: i32, %arg1: i32) -> (i32, i32) {
    %c0_i32 = arith.constant 0 : i32
    %c0_i32_0 = arith.constant 0 : i32
    %c0_i32_1 = arith.constant 0 : i32
    return %c0_i32, %c0_i32_0 : i32, i32
  }
  func.func @transform_1(%arg0: i32, %arg1: i32) -> (i32, i32) {
    %c0_i32 = arith.constant 0 : i32
    %c0_i32_0 = arith.constant 0 : i32
    %c0_i32_1 = arith.constant 0 : i32
    return %c0_i32, %c0_i32_0 : i32, i32
  }
  func.func @transform_2(%arg0: i32, %arg1: i32) -> (i32, i32, i32) {
    %c0_i32 = arith.constant 0 : i32
    %c0_i32_0 = arith.constant 0 : i32
    return %arg0, %c0_i32, %arg1 : i32, i32, i32
  }
  func.func @transform_3(%arg0: i32, %arg1: i32) -> (i32, i32, i32) {
    %c0_i32 = arith.constant 0 : i32
    %c0_i32_0 = arith.constant 0 : i32
    return %arg0, %c0_i32, %arg1 : i32, i32, i32
  }
}

</mosaic_0001>

<bundles_post_ra>
// kernel: _resblock_forward.2
= control target key start
LH: loop header
LB: loop body
LE: loop exit
PB: predicated region body
PF: predicated region fallthrough
CT: control target
= control target key end

     0   :  { %s441_s12 = smov 0   ;;  %s443_s13 = smov 0   ;;  %s495_s0 = inlined_call_operand.vmem [shape: f32[2,4,256], index: 0, kind: input, shape index: {}]   ;;  %s496_s1 = inlined_call_operand.vmem [shape: f32[4,1], index: 1, kind: output, shape index: {0}]   ;;  %s497_s2 = inlined_call_operand.vmem [shape: f32[4,1], index: 2, kind: output, shape index: {1}]   ;;  %s498_s3 = inlined_call_operand.vmem [shape: f32[4,4], index: 3, kind: output, shape index: {2}]  }
   0x1   :  { %s445_s14 = smov 0  }
   0x2 LB: > { %s26_s15 = sadd.s32 1, %s412_s13  ;;  %p359_p0 = scmp.ge.s32.totalorder %s416_s14, 1  ;;  %s416_s14 = sphi %s445_s14, %s14_s14   ;;  %s412_s13 = sphi %s443_s13, %s500_s13   ;;  %s408_s12 = sphi %s441_s12, %s499_s12  }
   0x3   : > { %p28_p1 = scmp.ge.s32.totalorder %s26_s15, 2  ;;  %p146_p2 = scmp.lt.s32.totalorder %s416_s14, 3 }
   0x5   : > { %s502_s15 = smov (%p28_p1, %s26_s15), 0  ;;  %p147_p3 = pnand %p359_p0, %p146_p2 }
   0x6   : > { %p170_p4 = scmp.lt.s32.totalorder (!%p147_p3), %s408_s12, 1  ;;  %p362_p5 = scmp.ne.s32.totalorder (!%p147_p3), %s408_s12, 0 }
   0x7   : > { %150 = sbr.rel (%p147_p3) target bundleno = 529 (0x211), region = 24 }
   0xe   : > { %s171_s16 = scalar_select %p170_p4, %s408_s12, 1 }
   0xf   : > { %184 = sbr.rel (%p362_p5) target bundleno = 169 (0xa9), region = 28  ;;  %vm188_vm0 = vcmask (!%p362_p5), 1043456   ;;  %vm196_vm1 = vcmask (!%p362_p5), 3072   ;;  %vm199_vm2 = vcmask (!%p362_p5), 27648   ;;  %v418_v5 = vmov (!%p362_p5), 0.0  }
  0x10   : > { %s365_s17 = sshll.u32 %s171_s16, 3  ;;  %198 = vst.msk [vmem:[%s497_s2] sm:$0xf] (!%p362_p5), %vm196_vm1, %v418_v5 }
  0x11   : > { %s177_s20 = scalar_lea.vmem %s495_s0, %s365_s17  ;;  %200 = vst.msk [vmem:[%s498_s3] sm:$0xf] (!%p362_p5), %vm199_vm2, %v418_v5 }
  0x12   : > { %v180_v0 = vld [vmem:[%s177_s20] sm:$0xff] }
  0x13   : > { %v186_v1 = vcombine.high (!%p362_p5), %v180_v0, %v180_v0  ;;  %v189_v2 = vsel (!%p362_p5), %vm188_vm0, %v180_v0, 0.0 }
  0x15   : > { %v190_v3 = vsel (!%p362_p5), %vm188_vm0, %v186_v1, 0.0 }
  0x16   : > { %v191_v4 = vadd.f32 %v190_v3, %v189_v2 }
  0x18   : > { %192 = vadd.xlane.f32.xlu0 %v191_v4 }
  0xa5   : > { %v193_v6 = vpop.xlane.xlu0 %192 }
  0xa6   : > { %v195_v7 = vmul.f32 0.00390625, %v193_v6 }
  0xa8   : > { %197 = vst.msk [vmem:[%s496_s1] sm:$0xf] %vm196_vm1, %v195_v7 }
  0xa9 PF: > { %v419_v9 = vmov 0   ;;  %v420_v10 = vmov 839922192   ;;  %v209_v12 = vlaneseq  ;;  %vm219_vm3 = vcmask 1043456  }
  0xaa   : > { %393 = vset.pattern.permute.xlu0 %v419_v9  ;;  %v207_v11 = vunpack.c.l.s4 %v420_v10  ;;  %v215_v23 = vld [vmem:[%s497_s2] sm:$0xf]  ;;  %vm226_vm4 = vcmask 3072   ;;  %vm300_vm5 = vcmask 27648  }
  0xab   : > { %v210_v14 = vshrl.u32 %v209_v12, 7  ;;  %v228_v26 = vld [vmem:[%s498_s3] sm:$0xf] }
  0xac   : > { %v208_v13 = vunpack.c.0.s8 %v207_v11 }
  0xae   : > { %v211_v15 = vsub.s32 %v208_v13, %v210_v14 }
  0xaf   : > { %v201_v8 = vld [vmem:[%s496_s1] sm:$0xf] }
  0xb0   : > { %204 = vperm.xlu0 %393, %v201_v8  }
 0x12f   : > { %v205_v16 = vpop.permute.xlu0 %204 }
 0x130   : > { %v212_v17 = vrot.slane %v205_v16, %v211_v15 }
 0x132   : > { %v214_v18 = vsub.f32 %v180_v0, %v212_v17 }
 0x134   : > { %v217_v19 = vcombine.high %v214_v18, %v214_v18  ;;  %v220_v20 = vsel %vm219_vm3, %v214_v18, 0.0 }
 0x136   : > { %229 = vmatprep.subr.mxu0 %v217_v19  ;;  %293 = vmatprep.mubr.f32.mxu0 %v217_v19  ;;  %v221_v21 = vsel %vm219_vm3, %v217_v19, 0.0 }
 0x137   : > { %230 = vmatpush1.xpose.msra.mxu0 %v214_v18  ;;  %v222_v22 = vadd.f32 %v221_v21, %v220_v20 }
 0x139   : > { %223 = vadd.xlane.f32.xlu0 %v222_v22 }
 0x13a   : > { %294 = vmatmul.mubr.f32.vlgmr.msra.gmra.mrb[0].mxu0 %v214_v18 }
 0x1c6   : > { %v224_v24 = vpop.xlane.xlu0 %223 }
 0x1c7   : > { %v225_v25 = vadd.f32 %v224_v24, %v215_v23 }
 0x1c9   : > { %227 = vst.msk [vmem:[%s497_s2] sm:$0xf] %vm226_vm4, %v225_v25 }
 0x20d   : > { %v295_v27 = vpop.f32.mrb[0].mxu0 }
 0x20e   : > { %v299_v28 = vadd.f32 %v295_v27, %v228_v26  ;;  %v297_v29 = vpop.f32.mrb[1].mxu0 }
 0x210   : > { %301 = vst.msk [vmem:[%s498_s3] sm:$0xf] %vm300_vm5, %v299_v28 }
 0x211 PF: > { %s14_s14 = sadd.s32 1, %s416_s14   ;;  %s499_s12 = smov %s412_s13 }
 0x212   : > { %p11_p6 = scmp.ge.s32.totalorder %s14_s14, 4   ;;  %s500_s13 = smov %s502_s15 }
 0x214   :  { %13 = sbr.rel (!%p11_p6) target bundleno = 2 (0x2), region = 70 }

// kernel: _resblock_forward.3
= control target key start
LH: loop header
LB: loop body
LE: loop exit
PB: predicated region body
PF: predicated region fallthrough
CT: control target
= control target key end

     0   :  { %s482_s12 = smov 0   ;;  %s484_s13 = smov 0   ;;  %s521_s0 = inlined_call_operand.vmem [shape: f32[4,4], index: 0, kind: input, shape index: {}]   ;;  %s522_s1 = inlined_call_operand.vmem [shape: f32[4,1], index: 1, kind: input, shape index: {}]   ;;  %s523_s2 = inlined_call_operand.vmem [shape: f32[2,4,256], index: 2, kind: input, shape index: {}]   ;;  %s524_s3 = inlined_call_operand.vmem [shape: f32[2,4,256], index: 3, kind: output, shape index: {}]  }
   0x1   :  { %s486_s14 = smov 0  }
   0x2 LB: > { %s25_s15 = sadd.s32 1, %s454_s13  ;;  %p396_p0 = scmp.ge.s32.totalorder %s458_s14, 1  ;;  %s458_s14 = sphi %s486_s14, %s13_s14   ;;  %s454_s13 = sphi %s484_s13, %s526_s13   ;;  %s450_s12 = sphi %s482_s12, %s525_s12  }
   0x3   : > { %p27_p1 = scmp.ge.s32.totalorder %s25_s15, 2  ;;  %p158_p2 = scmp.lt.s32.totalorder %s458_s14, 3 }
   0x5   : > { %s528_s15 = smov (%p27_p1, %s25_s15), 0  ;;  %p159_p3 = pnand %p396_p0, %p158_p2 }
   0x6   : > { %p191_p4 = scmp.lt.s32.totalorder (!%p159_p3), %s450_s12, 1  ;;  %v460_v0 = vmov (!%p159_p3), 0.0   ;;  %v212_v1 = vld [vmem:[%s522_s1] sm:$0xf] (!%p159_p3)  ;;  %v461_v2 = vmov (!%p159_p3), 0   ;;  %vm224_vm0 = vcmask (!%p159_p3), 1043456  }
   0x7   : > { %162 = sbr.rel (%p159_p3) target bundleno = 240 (0xf0), region = 32  ;;  %293 = vmatprep.mubr.f32.mxu0 (!%p159_p3), %v460_v0  ;;  %434 = vset.pattern.permute.xlu0 (!%p159_p3), %v461_v2  ;;  %v210_v5 = vld [vmem:[%s521_s0] sm:$0xf] (!%p159_p3)  ;;  %vm220_vm1 = vcmask (!%p159_p3), 31744  }
   0x8   : > { %215 = vperm.xlu0 (!%p159_p3), %434, %v212_v1  }
   0xe   : > { %s530_s12 = smov (!%p191_p4, %s450_s12), 1 }
   0xf   : > { %s406_s18 = sshll.u32 %s530_s12, 3 }
  0x10   : > { %s198_s21 = scalar_lea.vmem %s523_s2, %s406_s18  ;;  %s208_s26 = scalar_lea.vmem %s524_s3, %s406_s18 }
  0x11   : > { %v211_v3 = vld [vmem:[%s198_s21] sm:$0xff] }
  0x12   : > { %v219_v4 = vcombine.high %v211_v3, %v211_v3 }
  0x14   : > { %401 = vmatprep.subr.msk.mxu0 %vm224_vm0, %v219_v4 }
  0x15   : > { %402 = vmatpush1.msk.msra.mxu0 %vm224_vm0, %v211_v3 }
  0x16   : > { %403 = vmatmul.mubr.msk.f32.vlgmr.msra.gmra.mrb[0].mxu0 %vm220_vm1, %v210_v5 }
  0x87   : > { %v216_v6 = vpop.permute.xlu0 %215 }
  0xe9   : > { %v295_v7 = vpop.f32.mrb[0].mxu0 }
  0xea   : > { %v296_v8 = vadd.f32 %v295_v7, %v216_v6  ;;  %v297_v9 = vpop.f32.mrb[1].mxu0 }
  0xeb   : > { %v298_v10 = vadd.f32 %v297_v9, %v216_v6 }
  0xed   : > { %v302_v11 = vcombine.low %v296_v8, %v298_v10 }
  0xef   : > { %304 = vst [vmem:[%s208_s26] sm:$0xff] %v302_v11 }
  0xf0 PF: > { %s13_s14 = sadd.s32 1, %s458_s14   ;;  %s525_s12 = smov %s454_s13 }
  0xf1   : > { %p10_p5 = scmp.ge.s32.totalorder %s13_s14, 4   ;;  %s526_s13 = smov %s528_s15 }
  0xf3   :  { %12 = sbr.rel (!%p10_p5) target bundleno = 2 (0x2), region = 62 }

</bundles_post_ra>
